<compile_context>
chip_gen: v7x
topology: tpu7x:2x2x1
jax: 0.10.0
libtpu: 0.0.40
codegen_flags: <defaults>
</compile_context>

<pallas_src>
import jax
import jax.numpy as jnp
from jax.experimental import pallas as pl
from jax.experimental.pallas import tpu as pltpu

HIDDEN_SIZE = 242          # forced inside the reference module's __init__
EPS = 1e-12                # module default eps, inside the sqrt (TF style)


def _layernorm_kernel(x_ref, w_ref, b_ref, o_ref):
    # x_ref: (tile_rows, H), w_ref/b_ref: (1, H), o_ref: (tile_rows, H)
    x = x_ref[...].astype(jnp.float32)
    u = jnp.mean(x, axis=-1, keepdims=True)            # mean over hidden
    d = x - u
    s = jnp.mean(d * d, axis=-1, keepdims=True)        # biased variance (two-pass form)
    inv = jax.lax.rsqrt(s + EPS)                        # eps inside the sqrt
    y = d * inv
    out = w_ref[...].astype(jnp.float32) * y + b_ref[...].astype(jnp.float32)
    o_ref[...] = out.astype(o_ref.dtype)


def _round_up(n, m):
    return ((n + m - 1) // m) * m


def layer_norm(x, weight, bias, *, tile_rows=1024):
    """x: (..., HIDDEN_SIZE); weight/bias: (HIDDEN_SIZE,)."""
    orig_shape = x.shape
    H = orig_shape[-1]
    assert H == HIDDEN_SIZE
    x2 = x.reshape(-1, H)
    R = x2.shape[0]

    # Tile must be a multiple of 8 (sublane); clamp to the (rounded-up) row
    # count so tiny inputs don't allocate an oversized block. Large inputs get
    # the full 1024-row tile (~1 MB/block f32 -> ~4 MB double-buffered in+out),
    # comfortably inside every generation's scoped VMEM.
    tr = max(8, min(_round_up(tile_rows, 8), _round_up(R, 8)))
    grid = (pl.cdiv(R, tr),)   # partial last block: OOB writes are masked off

    w2 = weight.reshape(1, H)
    b2 = bias.reshape(1, H)

    out = pl.pallas_call(
        _layernorm_kernel,
        out_shape=jax.ShapeDtypeStruct((R, H), x.dtype),
        grid_spec=pl.GridSpec(
            grid=grid,
            in_specs=[
                pl.BlockSpec((tr, H), lambda i: (i, 0)),
                pl.BlockSpec((1, H), lambda i: (0, 0)),   # weight: resident
                pl.BlockSpec((1, H), lambda i: (0, 0)),   # bias: resident
            ],
            out_specs=pl.BlockSpec((tr, H), lambda i: (i, 0)),
        ),
        compiler_params=pltpu.CompilerParams(
            dimension_semantics=("parallel",),
            # Headroom for tile_rows sweeps up to ~8K f32 rows while staying
            # well under v7x's 64 MiB per-TC VMEM (and v5e's 128 MiB physical).
            vmem_limit_bytes=48 * 1024 * 1024,
        ),
    )(x2, w2, b2)

    return out.reshape(orig_shape)


if __name__ == "__main__":
    key = jax.random.PRNGKey(0)
    batch, seq = 2, 8
    x = jax.random.normal(key, (batch, seq, HIDDEN_SIZE), dtype=jnp.float32)

    # Deterministic parameter init matching nn.Parameter(torch.ones/zeros)
    weight = jnp.ones((HIDDEN_SIZE,), dtype=jnp.float32)
    bias = jnp.zeros((HIDDEN_SIZE,), dtype=jnp.float32)

    y = layer_norm(x, weight, bias)
    y = jax.block_until_ready(y)

    # reference check in plain JAX
    u = jnp.mean(x, axis=-1, keepdims=True)
    s = jnp.mean((x - u) ** 2, axis=-1, keepdims=True)
    ref = weight * ((x - u) / jnp.sqrt(s + EPS)) + bias
    assert jnp.allclose(y, ref, atol=1e-5, rtol=1e-5), "mismatch vs reference"

    print("KERNEL_OK")
</pallas_src>

<mosaic_0001>
module attributes {stable_mosaic.version = 11 : i64} {
  func.func @_layernorm_kernel(%arg0: i32, %arg1: memref<16x242xf32, #tpu.memory_space<vmem>>, %arg2: memref<1x242xf32, #tpu.memory_space<vmem>>, %arg3: memref<1x242xf32, #tpu.memory_space<vmem>>, %arg4: memref<16x242xf32, #tpu.memory_space<vmem>>) attributes {dimension_semantics = [#tpu.dimension_semantics<parallel>], iteration_bounds = array<i64: 1>, scalar_prefetch = 0 : i64, scratch_operands = 0 : i64, tpu.core_type = #tpu.core_type<tc>, window_params = [{transform_indices = @transform_0, window_bounds = array<i64: 16, 242>}, {pipeline_mode = #tpu.pipeline_mode<synchronous>, transform_indices = @transform_1, window_bounds = array<i64: 1, 242>}, {pipeline_mode = #tpu.pipeline_mode<synchronous>, transform_indices = @transform_2, window_bounds = array<i64: 1, 242>}, {transform_indices = @transform_3, window_bounds = array<i64: 16, 242>}]} {
    %c0 = arith.constant 0 : index
    %c0_0 = arith.constant 0 : index
    %0 = vector.load %arg1[%c0, %c0_0] : memref<16x242xf32, #tpu.memory_space<vmem>>, vector<16x242xf32>
    %cst = arith.constant dense<0.000000e+00> : vector<16xf32>
    %1 = vector.multi_reduction <add>, %0, %cst [1] : vector<16x242xf32> to vector<16xf32>
    %2 = vector.shape_cast %1 : vector<16xf32> to vector<16x1xf32>
    %cst_1 = arith.constant 2.420000e+02 : f32
    %3 = vector.broadcast %cst_1 : f32 to vector<16x1xf32>
    %4 = arith.divf %2, %3 : vector<16x1xf32>
    %5 = vector.broadcast %4 : vector<16x1xf32> to vector<16x242xf32>
    %6 = arith.subf %0, %5 : vector<16x242xf32>
    %7 = arith.mulf %6, %6 : vector<16x242xf32>
    %cst_2 = arith.constant dense<0.000000e+00> : vector<16xf32>
    %8 = vector.multi_reduction <add>, %7, %cst_2 [1] : vector<16x242xf32> to vector<16xf32>
    %9 = vector.shape_cast %8 : vector<16xf32> to vector<16x1xf32>
    %cst_3 = arith.constant 2.420000e+02 : f32
    %10 = vector.broadcast %cst_3 : f32 to vector<16x1xf32>
    %11 = arith.divf %9, %10 : vector<16x1xf32>
    %cst_4 = arith.constant 9.99999996E-13 : f32
    %12 = vector.broadcast %cst_4 : f32 to vector<16x1xf32>
    %13 = arith.addf %11, %12 : vector<16x1xf32>
    %14 = math.rsqrt %13 : vector<16x1xf32>
    %15 = vector.broadcast %14 : vector<16x1xf32> to vector<16x242xf32>
    %16 = arith.mulf %6, %15 : vector<16x242xf32>
    %c0_5 = arith.constant 0 : index
    %c0_6 = arith.constant 0 : index
    %17 = vector.load %arg2[%c0_5, %c0_6] : memref<1x242xf32, #tpu.memory_space<vmem>>, vector<1x242xf32>
    %18 = vector.broadcast %17 : vector<1x242xf32> to vector<16x242xf32>
    %19 = arith.mulf %18, %16 : vector<16x242xf32>
    %c0_7 = arith.constant 0 : index
    %c0_8 = arith.constant 0 : index
    %20 = vector.load %arg3[%c0_7, %c0_8] : memref<1x242xf32, #tpu.memory_space<vmem>>, vector<1x242xf32>
    %21 = vector.broadcast %20 : vector<1x242xf32> to vector<16x242xf32>
    %22 = arith.addf %19, %21 : vector<16x242xf32>
    %c0_9 = arith.constant 0 : index
    %c0_10 = arith.constant 0 : index
    %23 = vector.load %arg4[%c0_9, %c0_10] : memref<16x242xf32, #tpu.memory_space<vmem>>, vector<16x242xf32>
    tpu.vector_store %arg4[%c0_9, %c0_10], %22 {strides = array<i32>} : memref<16x242xf32, #tpu.memory_space<vmem>>, vector<16x242xf32>,
    return
  }
  func.func @transform_0(%arg0: i32) -> (i32, i32) {
    %c0_i32 = arith.constant 0 : i32
    %c0_i32_0 = arith.constant 0 : i32
    return %arg0, %c0_i32 : i32, i32
  }
  func.func @transform_1(%arg0: i32) -> (i32, i32) {
    %c0_i32 = arith.constant 0 : i32
    %c0_i32_0 = arith.constant 0 : i32
    %c0_i32_1 = arith.constant 0 : i32
    return %c0_i32, %c0_i32_0 : i32, i32
  }
  func.func @transform_2(%arg0: i32) -> (i32, i32) {
    %c0_i32 = arith.constant 0 : i32
    %c0_i32_0 = arith.constant 0 : i32
    %c0_i32_1 = arith.constant 0 : i32
    return %c0_i32, %c0_i32_0 : i32, i32
  }
  func.func @transform_3(%arg0: i32) -> (i32, i32) {
    %c0_i32 = arith.constant 0 : i32
    %c0_i32_0 = arith.constant 0 : i32
    return %arg0, %c0_i32 : i32, i32
  }
}

</mosaic_0001>

<bundles_post_ra>
// kernel: tpu_custom_call.1
= control target key start
LH: loop header
LB: loop body
LE: loop exit
PB: predicated region body
PF: predicated region fallthrough
CT: control target
= control target key end

     0   :  { %8 = vsyncpa [#allocation3], 0  ;;  %s246_s0 = inlined_call_operand.hbm [shape: f32[16,242], index: 0, kind: input, shape index: {}]   ;;  %s247_s1 = inlined_call_operand.vmem [shape: f32[1,242], index: 1, kind: input, shape index: {}]   ;;  %s248_s2 = inlined_call_operand.vmem [shape: f32[1,242], index: 2, kind: input, shape index: {}]   ;;  %s249_s3 = inlined_call_operand.hbm [shape: f32[16,242], index: 3, kind: output, shape index: {}]  }
   0x1   :  { %9 = vsyncpa [#allocation4], 0  ;;  %s180_s12 = smov [#allocation2]   ;;  %s132_s16 = scalar_lea.hbm %s246_s0, 512 }
   0x2   :  { %s15_s13 = sshll.u32 %s180_s12, 4  ;;  %p133_p0 = scmp.ne.s32.totalorder %s246_s0, %s132_s16  ;;  %s16_s13 = int_to_ptr.vmem [resolvable:$true] %s15_s13 }
   0x3   :  { %p136_p1 = scmp.lt.u32.totalorder %s132_s16, %s246_s0 }
   0x5   :  { %p138_p2 = pnand %p136_p1, %p133_p0 }
   0x7   :  { %141 = shalt.err (!%p138_p2)
}
   0x8   :  { %s142_s21 = scalar_lea.vmem %s16_s13, 512  ;;  %p147_p4 = scmp.lt.s32.totalorder %s16_s13, %s16_s13 }
   0x9   :  { %p143_p3 = scmp.ne.s32.totalorder %s16_s13, %s142_s21  ;;  %p148_p5 = scmp.lt.s32.totalorder %s142_s21, %s142_s21 }
   0xb   :  { %p149_p6 = por %p148_p5, %p147_p4 }
   0xd   :  { %p150_p7 = pnand %p149_p6, %p143_p3 }
   0xf   :  { %153 = shalt.err (!%p150_p7)
}
  0x10   :  { %s181_s22 = smov 256   ;;  %s182_s23 = smov 16  }
  0x11   :  { %21 = dma.hbm_to_vmem [thread:$0]  %s246_s0, 512, %s16_s13, [#allocation3], %s181_s22, %s181_s22, %s182_s23  }
  0x12   :  { %176 = dma.done.wait [#allocation3], 512  }
  0x13   :  { %177 = vsyncadd [#allocation3], 4294966784  ;;  %vm33_vm0 = vcmask 932864   ;;  %v29_v0 = vld [vmem:[#allocation2] sm:$0xff]  ;;  %v30_v1 = vld [vmem:[#allocation2 + $0x8] sm:$0xff]  ;;  %v73_v26 = vlaneseq  ;;  %s183_s29 = smov [#allocation5]  }
  0x14   :  { %v34_v2 = vsel %vm33_vm0, %v30_v1, 0.0  ;;  %v31_v3 = vld [vmem:[#allocation2 + $0x10] sm:$0xff]  ;;  %v32_v4 = vld [vmem:[#allocation2 + $0x18] sm:$0xff]  ;;  %v71_v34 = vld [vmem:[%s247_s1] sm:$0x3]  ;;  %s112_s1 = sshll.u32 %s183_s29, 4  ;;  %s113_s1 = int_to_ptr.vmem [resolvable:$true] %s112_s1 }
  0x15   :  { %v35_v5 = vadd.f32 %v34_v2, %v29_v0  ;;  %v38_v6 = vsel %vm33_vm0, %v32_v4, 0.0  ;;  %v74_v30 = vshrl.u32 %v73_v26, 7  ;;  %v87_v35 = vld [vmem:[%s248_s2] sm:$0x3]  ;;  %s154_s2 = scalar_lea.vmem %s113_s1, 512  ;;  %p159_p9 = scmp.lt.s32.totalorder %s113_s1, %s113_s1 }
  0x16   :  { %v39_v7 = vadd.f32 %v38_v6, %v31_v3  ;;  %p155_p8 = scmp.ne.s32.totalorder %s113_s1, %s154_s2  ;;  %p160_p10 = scmp.lt.s32.totalorder %s154_s2, %s154_s2 }
  0x17   :  { %36 = vadd.xlane.f32.xlu0 %v35_v5  ;;  %v79_v32 = vsub.s32 1, %v74_v30  ;;  %v75_v33 = vsub.s32 0, %v74_v30 }
  0x18   :  { %p161_p11 = por %p160_p10, %p159_p9 }
  0x19   :  { %v80_v36 = vrot.slane %v71_v34, %v79_v32  ;;  %v76_v37 = vrot.slane %v71_v34, %v75_v33  ;;  %v92_v41 = vrot.slane %v87_v35, %v75_v33  ;;  %v96_v42 = vrot.slane %v87_v35, %v79_v32 }
  0x1a   :  { %p162_p12 = pnand %p161_p11, %p155_p8 }
  0x1b   :  { %40 = vadd.xlane.f32.xlu0 %v39_v7 }
  0xa4   :  { %v37_v8 = vpop.xlane.xlu0 %36 }
  0xa5   :  { %v43_v9 = vmul.f32 0.004132231, %v37_v8 }
  0xa7   :  { %v45_v10 = vsub.f32 %v29_v0, %v43_v9  ;;  %v46_v11 = vsub.f32 %v30_v1, %v43_v9 }
  0xa8   :  { %v41_v12 = vpop.xlane.xlu0 %40 }
  0xa9   :  { %v44_v13 = vmul.f32 0.004132231, %v41_v12  ;;  %v49_v14 = vmul.f32 %v45_v10, %v45_v10  ;;  %v50_v15 = vmul.f32 %v46_v11, %v46_v11 }
  0xab   :  { %v47_v16 = vsub.f32 %v31_v3, %v44_v13  ;;  %v48_v17 = vsub.f32 %v32_v4, %v44_v13  ;;  %v53_v18 = vsel %vm33_vm0, %v50_v15, 0.0 }
  0xac   :  { %v54_v19 = vadd.f32 %v53_v18, %v49_v14 }
  0xad   :  { %v52_v20 = vmul.f32 %v48_v17, %v48_v17  ;;  %v51_v21 = vmul.f32 %v47_v16, %v47_v16 }
  0xae   :  { %55 = vadd.xlane.f32.xlu1 %v54_v19 }
  0xaf   :  { %v57_v22 = vsel %vm33_vm0, %v52_v20, 0.0 }
  0xb0   :  { %v58_v23 = vadd.f32 %v57_v22, %v51_v21 }
  0xb2   :  { %59 = vadd.xlane.f32.xlu1 %v58_v23 }
 0x13b   :  { %v56_v24 = vpop.xlane.xlu1 %55 }
 0x13c   :  { %v61_v25 = vmul.f32 0.004132231, %v56_v24 }
 0x13e   :  { %v63_v27 = vadd.f32 1e-12, %v61_v25 }
 0x13f   :  { %v60_v28 = vpop.xlane.xlu1 %59 }
 0x140   :  { %128 = vrsqrt.f32 %v63_v27  ;;  %v62_v29 = vmul.f32 0.004132231, %v60_v28 }
 0x142   :  { %v64_v31 = vadd.f32 1e-12, %v62_v29 }
 0x144   :  { %130 = vrsqrt.f32 %v64_v31 }
 0x14a   :  { %v129_v38 = vpop.eup %128 }
 0x14b   :  { %v67_v39 = vmul.f32 %v129_v38, %v45_v10  ;;  %v68_v40 = vmul.f32 %v129_v38, %v46_v11 }
 0x14d   :  { %v84_v43 = vmul.f32 %v80_v36, %v68_v40  ;;  %v83_v44 = vmul.f32 %v76_v37, %v67_v39 }
 0x14e   :  { %v131_v45 = vpop.eup %130 }
 0x14f   :  { %v69_v46 = vmul.f32 %v131_v45, %v47_v16  ;;  %v70_v47 = vmul.f32 %v131_v45, %v48_v17  ;;  %v99_v48 = vadd.f32 %v92_v41, %v83_v44  ;;  %v100_v49 = vadd.f32 %v96_v42, %v84_v43 }
 0x151   :  { %v86_v50 = vmul.f32 %v80_v36, %v70_v47  ;;  %v85_v51 = vmul.f32 %v76_v37, %v69_v46  ;;  %103 = vst [vmem:[#allocation5] sm:$0xff] %v99_v48  ;;  %104 = vst.msk [vmem:[#allocation5 + $0x8] sm:$0xff] %vm33_vm0, %v100_v49 }
 0x153   :  { %v101_v52 = vadd.f32 %v92_v41, %v85_v51  ;;  %v102_v53 = vadd.f32 %v96_v42, %v86_v50 }
 0x155   :  { %105 = vst [vmem:[#allocation5 + $0x10] sm:$0xff] %v101_v52  ;;  %106 = vst.msk [vmem:[#allocation5 + $0x18] sm:$0xff] %vm33_vm0, %v102_v53 }
 0x156   :  { %165 = shalt.err (!%p162_p12)
}
 0x157   :  { %s166_s5 = scalar_lea.hbm %s249_s3, 512 }
 0x158   :  { %p167_p13 = scmp.ne.s32.totalorder %s249_s3, %s166_s5  ;;  %p170_p0 = scmp.lt.u32.totalorder %s166_s5, %s249_s3 }
 0x15a   :  { %p172_p1 = pnand %p170_p0, %p167_p13 }
 0x15c   :  { %175 = shalt.err (!%p172_p1)
}
 0x15d   :  { %118 = dma.vmem_to_hbm [thread:$0]  %s113_s1, 512, %s249_s3, [#allocation4], %s181_s22, %s181_s22, %s182_s23  }
 0x15e   :  { %178 = dma.done.wait [#allocation4], 512  }
 0x15f   :  { %179 = vsyncadd [#allocation4], 4294966784 }
 0x160   :  { %122 = vsyncpa [#allocation3], 1 }
 0x161   :  { %123 = vsyncpa [#allocation4], 1 }

</bundles_post_ra>
